<compile_context>
chip_gen: v7x
topology: tpu7x:2x2x1
jax: 0.10.0
libtpu: 0.0.40
codegen_flags: <defaults>
</compile_context>

<pallas_src>
import functools

import jax
import jax.numpy as jnp
from jax.experimental import pallas as pl
from jax.experimental.pallas import tpu as pltpu


def _round_up(n, m):
    return ((n + m - 1) // m) * m


def _pick_tile(n_pad):
    """Largest of {512,256,128} dividing n_pad while keeping >=2 row tiles
    (so 'parallel' grid axes can shard across the 2 TCs on v7x)."""
    for t in (512, 256, 128):
        if n_pad % t == 0 and n_pad // t >= 2:
            return t
    return 128


def _conv_vmem_limit(tm, tk, h):
    """VMEM ask derived from the real (double-buffered) tile footprint."""
    est = (2 * tm * tk * 2        # A tile stream (bf16, double buffered)
           + 2 * tk * h * 2       # xw_rel stream (bf16)
           + 2 * tm * h * 2       # xw_root (resident per row tile)
           + 2 * tm * h * 2       # y output (bf16)
           + 2 * tm * 128 * 4     # lane-dense score output (f32)
           + tm * h * 4           # f32 accumulator scratch
           + 16 * h * 4)          # bias / pooling vector / misc
    return max(int(2 * est) + (4 << 20), 8 << 20)


# ----------------------------------------------------------------------------
# Kernel 0: hoisted node transform  XW = x @ [W_rel | W_root]  (one 256-wide dot)
# ----------------------------------------------------------------------------
def node_transform_kernel(x_ref, wcat_ref, rel_ref, root_ref):
    xw = jnp.dot(x_ref[...], wcat_ref[...], preferred_element_type=jnp.float32)
    h = rel_ref.shape[-1]
    rel_ref[...] = xw[:, :h].astype(rel_ref.dtype)
    root_ref[...] = xw[:, h:].astype(root_ref.dtype)


def node_transform(x, w_cat, *, tm):
    n, cin = x.shape
    two_h = w_cat.shape[1]
    h = two_h // 2
    return pl.pallas_call(
        node_transform_kernel,
        grid=(n // tm,),
        in_specs=[
            pl.BlockSpec((tm, cin), lambda t: (t, 0)),
            pl.BlockSpec((cin, two_h), lambda t: (0, 0)),
        ],
        out_specs=[
            pl.BlockSpec((tm, h), lambda t: (t, 0)),
            pl.BlockSpec((tm, h), lambda t: (t, 0)),
        ],
        out_shape=(jax.ShapeDtypeStruct((n, h), jnp.bfloat16),
                   jax.ShapeDtypeStruct((n, h), jnp.bfloat16)),
        compiler_params=pltpu.CompilerParams(
            dimension_semantics=("parallel",)),
    )(x, w_cat)


# ----------------------------------------------------------------------------
# Kernel 1: A @ XW_rel accumulation + root term + ReLU + TopK score.
# ----------------------------------------------------------------------------
def graph_conv_kernel(a_ref, xwrel_ref, xwroot_ref, b_ref, p_ref,
                      y_ref, s_ref, acc_ref):
    k = pl.program_id(1)

    @pl.when(k == 0)
    def _():
        acc_ref[...] = jnp.zeros_like(acc_ref)

    # neighbor-sum term: A[i, k] @ (x[k] @ W_rel)   (bf16 MXU, f32 accumulate)
    acc_ref[...] += jnp.dot(a_ref[...], xwrel_ref[...],
                            preferred_element_type=jnp.float32)

    @pl.when(k == pl.num_programs(1) - 1)
    def _():
        y = jnp.maximum(
            acc_ref[...] + xwroot_ref[...].astype(jnp.float32) + b_ref[...],
            0.0)                                            # ReLU
        y_ref[...] = y.astype(y_ref.dtype)                  # bf16 writeback
        # TopKPooling score: tanh((y . p) / ||p||)  (p_ref already normalized);
        # stored lane-dense (broadcast across 128 lanes), column 0 used outside.
        s = jnp.sum(y * p_ref[...], axis=-1, keepdims=True)
        s_ref[...] = jnp.broadcast_to(jnp.tanh(s), s_ref.shape)


def graph_conv_relu_score(adj, xw_rel, xw_root, b, p_hat, *, tm, tk):
    n = adj.shape[0]
    h = xw_rel.shape[1]
    grid = (n // tm, n // tk)
    return pl.pallas_call(
        graph_conv_kernel,
        grid=grid,
        in_specs=[
            pl.BlockSpec((tm, tk), lambda i, k: (i, k)),     # A tile
            pl.BlockSpec((tk, h), lambda i, k: (k, 0)),      # XW_rel (source)
            pl.BlockSpec((tm, h), lambda i, k: (i, 0)),      # XW_root (dest)
            pl.BlockSpec((1, h), lambda i, k: (0, 0)),       # bias
            pl.BlockSpec((1, h), lambda i, k: (0, 0)),       # normalized pool vec
        ],
        out_specs=[
            pl.BlockSpec((tm, h), lambda i, k: (i, 0)),      # conv output (bf16)
            pl.BlockSpec((tm, 128), lambda i, k: (i, 0)),    # lane-dense score
        ],
        out_shape=(jax.ShapeDtypeStruct((n, h), jnp.bfloat16),
                   jax.ShapeDtypeStruct((n, 128), jnp.float32)),
        scratch_shapes=[pltpu.VMEM((tm, h), jnp.float32)],
        compiler_params=pltpu.CompilerParams(
            dimension_semantics=("parallel", "arbitrary"),
            vmem_limit_bytes=_conv_vmem_limit(tm, tk, h)),
    )(adj, xw_rel, xw_root, b, p_hat)


# ----------------------------------------------------------------------------
# Kernel 2: TopK gating + global max/mean readout, tiled over nodes.
# ----------------------------------------------------------------------------
def gate_readout_kernel(y_ref, gate_ref, seg_ref, invc_ref, xg_ref, r_ref,
                        max_acc, sum_acc, *, num_graphs):
    t = pl.program_id(0)

    @pl.when(t == 0)
    def _():
        max_acc[...] = jnp.full(max_acc.shape, -jnp.inf, jnp.float32)
        sum_acc[...] = jnp.zeros(sum_acc.shape, jnp.float32)

    y = y_ref[...].astype(jnp.float32)
    xg = y * gate_ref[...]                         # gated node features (f32)
    xg_bf = xg.astype(jnp.bfloat16)
    xg_ref[...] = xg_bf                            # bf16 features for next conv

    seg = seg_ref[...]                             # (B, tn) kept-node one-hot bf16
    # mean accumulation via MXU: seg @ xg
    sum_acc[...] += jnp.dot(seg, xg_bf, preferred_element_type=jnp.float32)

    # running per-graph max over this tile
    neg = jnp.float32(-jnp.inf)
    tile_maxes = []
    for g in range(num_graphs):                    # static, small B
        mask = seg[g][:, None] > 0
        tile_maxes.append(
            jnp.max(jnp.where(mask, xg, neg), axis=0, keepdims=True))
    tile_max = jnp.concatenate(tile_maxes, axis=0)           # (B, h)
    max_acc[...] = jnp.maximum(max_acc[...], tile_max)

    @pl.when(t == pl.num_programs(0) - 1)
    def _():
        mean = sum_acc[...] * invc_ref[...]
        r_ref[...] = jnp.concatenate([max_acc[...], mean], axis=-1)


def gate_readout(y, gate, seg, inv_cnt, *, tn):
    n, h = y.shape
    bsz = seg.shape[0]
    return pl.pallas_call(
        functools.partial(gate_readout_kernel, num_graphs=bsz),
        grid=(n // tn,),
        in_specs=[
            pl.BlockSpec((tn, h), lambda t: (t, 0)),          # y (bf16)
            pl.BlockSpec((tn, 1), lambda t: (t, 0)),          # gate = tanh(s)*keep
            pl.BlockSpec((bsz, tn), lambda t: (0, t)),        # kept segments (bf16)
            pl.BlockSpec((bsz, 1), lambda t: (0, 0)),         # 1/count
        ],
        out_specs=[
            pl.BlockSpec((tn, h), lambda t: (t, 0)),          # gated feats (bf16)
            pl.BlockSpec((bsz, 2 * h), lambda t: (0, 0)),     # (B, 256) readout
        ],
        out_shape=(jax.ShapeDtypeStruct((n, h), jnp.bfloat16),
                   jax.ShapeDtypeStruct((bsz, 2 * h), jnp.float32)),
        scratch_shapes=[pltpu.VMEM((bsz, h), jnp.float32),    # running max
                        pltpu.VMEM((bsz, h), jnp.float32)],   # running sum
        compiler_params=pltpu.CompilerParams(
            dimension_semantics=("arbitrary",)),
    )(y, gate, seg, inv_cnt)


# ----------------------------------------------------------------------------
# Kernel 3: fully fused MLP head (sum readouts, Linear+SiLU stack, log_softmax).
# ----------------------------------------------------------------------------
def mlp_head_kernel(*refs, num_layers, num_classes):
    r1, r2, r3 = refs[0], refs[1], refs[2]
    o_ref = refs[-1]
    wb = refs[3:-1]
    x = r1[...] + r2[...] + r3[...]
    for layer in range(num_layers):
        w = wb[2 * layer][...]                       # bf16 weight
        b = wb[2 * layer + 1][...]                   # f32 bias
        x = jnp.dot(x.astype(w.dtype), w,
                    preferred_element_type=jnp.float32) + b
        if layer < num_layers - 1:
            x = x * (1.0 / (1.0 + jnp.exp(-x)))      # exact SiLU (x*sigmoid(x))
            # TODO(synk): F.dropout(p=0.5) skipped (eval-mode forward).
        else:
            col = jax.lax.broadcasted_iota(jnp.int32, x.shape, dimension=1)
            x = jnp.where(col < num_classes, x, -jnp.inf)   # mask padded classes
            m = jnp.max(x, axis=-1, keepdims=True)
            z = x - m
            lse = jnp.log(jnp.sum(jnp.exp(z), axis=-1, keepdims=True))
            x = z - lse
    o_ref[...] = x


def mlp_head(r1, r2, r3, layers, num_classes):
    flat = []
    for w, b in layers:
        flat += [w, b]
    bsz = r1.shape[0]
    out_dim = layers[-1][0].shape[1]

    def full(shape):
        return pl.BlockSpec(shape, lambda i, _n=len(shape): (0,) * _n)

    in_specs = ([full(r1.shape), full(r2.shape), full(r3.shape)]
                + [full(a.shape) for a in flat])
    return pl.pallas_call(
        functools.partial(mlp_head_kernel, num_layers=len(layers),
                          num_classes=num_classes),
        grid=(1,),
        in_specs=in_specs,
        out_specs=full((bsz, out_dim)),
        out_shape=jax.ShapeDtypeStruct((bsz, out_dim), jnp.float32),
    )(r1, r2, r3, *flat)


# ----------------------------------------------------------------------------
# Plain-JAX per-graph top-k node selection (data-dependent; not a Pallas op).
# ----------------------------------------------------------------------------
def _topk_keep(score, seg_full, active, ratio):
    """keep[i]=1 iff node i is in the top ceil(ratio * n_active_g) of its graph."""
    n = score.shape[0]
    neg = jnp.finfo(jnp.float32).min
    keep = jnp.zeros_like(active)
    for g in range(seg_full.shape[0]):           # static, small number of graphs
        memb = seg_full[g] * active
        s_g = jnp.where(memb > 0, score, neg)
        n_act = jnp.sum(memb)
        k_g = jnp.ceil(ratio * n_act).astype(jnp.int32)
        order = jnp.argsort(-s_g)
        ranks = jnp.zeros((n,), jnp.int32).at[order].set(
            jnp.arange(n, dtype=jnp.int32))
        keep = keep + jnp.where((ranks < k_g) & (memb > 0), 1.0, 0.0)
    return keep


# ----------------------------------------------------------------------------
# Model
# ----------------------------------------------------------------------------
class TopkPoolNetPallas:
    HIDDEN = 128      # GraphConv width, as in the PyTorch module
    RATIO = 0.8       # TopKPooling ratio

    def __init__(self, num_features, num_classes, width, key):
        self.num_classes = num_classes
        h = self.HIDDEN
        self.f_pad = _round_up(num_features, 128)

        def glorot(k, shape):
            bound = (6.0 / (shape[0] + shape[1])) ** 0.5
            return jax.random.uniform(k, shape, jnp.float32, -bound, bound)

        # Three GraphConv + TopKPooling stages; W_rel / W_root fused column-wise
        # into one 256-wide bf16 weight for the hoisted node-transform matmul.
        self.convs = []
        cin_real, cin_pad = num_features, self.f_pad
        for _ in range(3):
            key, k1, k2, kp = jax.random.split(key, 4)
            w_cat = jnp.zeros((cin_pad, 2 * h), jnp.float32)
            w_cat = w_cat.at[:cin_real, :h].set(glorot(k1, (cin_real, h)))
            w_cat = w_cat.at[:cin_real, h:].set(glorot(k2, (cin_real, h)))
            w_cat = w_cat.astype(jnp.bfloat16)
            b = jnp.zeros((1, h), jnp.float32)
            p = jax.random.normal(kp, (h,), jnp.float32)
            p_hat = (p / jnp.linalg.norm(p)).reshape(1, h)
            self.convs.append((w_cat, b, p_hat))
            cin_real, cin_pad = h, h

        # MLP head: Linear(256, width[0]) ... Linear(width[-1], num_classes),
        # zero-padded to 128-wide lanes; weights bf16, biases f32.
        dims = [2 * h] + list(width) + [num_classes]
        dims_pad = [2 * h] + [_round_up(d, 128) for d in dims[1:]]
        self.mlp = []
        for i in range(len(dims) - 1):
            key, kw = jax.random.split(key)
            w = jnp.zeros((dims_pad[i], dims_pad[i + 1]), jnp.float32)
            w = w.at[:dims[i], :dims[i + 1]].set(glorot(kw, (dims[i], dims[i + 1])))
            b = jnp.zeros((1, dims_pad[i + 1]), jnp.float32)
            self.mlp.append((w.astype(jnp.bfloat16), b))

    def __call__(self, x, edge_index, batch, num_graphs):
        n, f = x.shape
        n_pad = _round_up(max(n, 8), 128)
        tm = _pick_tile(n_pad)          # dst-row tile (>=2 tiles when possible)
        tk = tm                         # src-node (reduction) tile

        # Padded bf16 node features and dense bf16 adjacency A[dst, src].
        xp = jnp.zeros((n_pad, self.f_pad), jnp.float32).at[:n, :f].set(x)
        cur = xp.astype(jnp.bfloat16)
        src, dst = edge_index[0], edge_index[1]
        adj = (jnp.zeros((n_pad, n_pad), jnp.float32)
               .at[dst, src].add(1.0).astype(jnp.bfloat16))

        node_ids = jnp.arange(n_pad)
        batch_pad = jnp.full((n_pad,), -1, jnp.int32).at[:n].set(
            batch.astype(jnp.int32))
        seg_full = (batch_pad[None, :]
                    == jnp.arange(num_graphs, dtype=jnp.int32)[:, None]
                    ).astype(jnp.float32)
        active = (node_ids < n).astype(jnp.float32)

        readouts = []
        for (w_cat, b, p_hat) in self.convs:
            # kernel 0: hoisted node transform (single 256-wide dot)
            xw_rel, xw_root = node_transform(cur, w_cat, tm=tm)
            # kernel 1: A @ XW_rel + XW_root + b, ReLU, TopK score
            y, s = graph_conv_relu_score(adj, xw_rel, xw_root, b, p_hat,
                                         tm=tm, tk=tk)
            score = s[:, 0]
            keep = _topk_keep(score, seg_full, active, self.RATIO)
            active = active * keep
            gate = (score * active)[:, None]                 # tanh(score) * keep
            seg_kept_f = seg_full * active[None, :]
            inv_cnt = 1.0 / jnp.maximum(
                jnp.sum(seg_kept_f, axis=1, keepdims=True), 1.0)
            seg_kept = seg_kept_f.astype(jnp.bfloat16)
            # kernel 2: gate + global max/mean readout (tiled over nodes)
            cur, r = gate_readout(y, gate, seg_kept, inv_cnt, tn=tm)
            readouts.append(r)

        out = mlp_head(readouts[0], readouts[1], readouts[2], self.mlp,
                       self.num_classes)
        return out[:, :self.num_classes]


if __name__ == "__main__":
    key = jax.random.PRNGKey(0)

    # Small synthetic 2-graph batch.
    num_features = 16
    num_classes = 6
    width = [32, 64]
    n0, n1 = 14, 18            # nodes per graph
    e0, e1 = 40, 48            # edges per graph
    num_nodes = n0 + n1
    num_graphs = 2

    key, kx, ks0, kd0, ks1, kd1, kw = jax.random.split(key, 7)
    x = jax.random.normal(kx, (num_nodes, num_features), jnp.float32)
    src0 = jax.random.randint(ks0, (e0,), 0, n0, jnp.int32)
    dst0 = jax.random.randint(kd0, (e0,), 0, n0, jnp.int32)
    src1 = jax.random.randint(ks1, (e1,), 0, n1, jnp.int32) + n0
    dst1 = jax.random.randint(kd1, (e1,), 0, n1, jnp.int32) + n0
    edge_index = jnp.stack([jnp.concatenate([src0, src1]),
                            jnp.concatenate([dst0, dst1])], axis=0)
    batch = jnp.concatenate([jnp.zeros((n0,), jnp.int32),
                             jnp.ones((n1,), jnp.int32)])

    model = TopkPoolNetPallas(num_features, num_classes, width, kw)
    out = model(x, edge_index, batch, num_graphs)
    out = jax.block_until_ready(out)

    assert out.shape == (num_graphs, num_classes)
    assert bool(jnp.all(jnp.isfinite(out)))
    # log_softmax rows sum (in probability space) to ~1
    assert bool(jnp.allclose(jnp.sum(jnp.exp(out), axis=-1), 1.0, atol=1e-3))
    print("KERNEL_OK")
</pallas_src>

<mosaic_0001>
module attributes {stable_mosaic.version = 11 : i64} {
  func.func @node_transform_kernel(%arg0: i32, %arg1: memref<128x128xbf16, #tpu.memory_space<vmem>>, %arg2: memref<128x256xbf16, #tpu.memory_space<vmem>>, %arg3: memref<128x128xbf16, #tpu.memory_space<vmem>>, %arg4: memref<128x128xbf16, #tpu.memory_space<vmem>>) attributes {dimension_semantics = [#tpu.dimension_semantics<parallel>], iteration_bounds = array<i64: 1>, scalar_prefetch = 0 : i64, scratch_operands = 0 : i64, tpu.core_type = #tpu.core_type<tc>, window_params = [{transform_indices = @transform_0, window_bounds = array<i64: 128, 128>}, {pipeline_mode = #tpu.pipeline_mode<synchronous>, transform_indices = @transform_1, window_bounds = array<i64: 128, 256>}, {transform_indices = @transform_2, window_bounds = array<i64: 128, 128>}, {transform_indices = @transform_3, window_bounds = array<i64: 128, 128>}]} {
    %c0 = arith.constant 0 : index
    %c0_0 = arith.constant 0 : index
    %0 = vector.load %arg1[%c0, %c0_0] : memref<128x128xbf16, #tpu.memory_space<vmem>>, vector<128x128xbf16>
    %c0_1 = arith.constant 0 : index
    %c0_2 = arith.constant 0 : index
    %1 = vector.load %arg2[%c0_1, %c0_2] : memref<128x256xbf16, #tpu.memory_space<vmem>>, vector<128x256xbf16>
    %cst = arith.constant dense<0.000000e+00> : vector<128x256xf32>
    %2 = tpu.matmul %0, %1, %cst {dimension_numbers = #tpu.dot_dimension_numbers<[1], [0], [0], [1], [0, 0, 1, 1], [], []>} : vector<128x128xbf16>, vector<128x256xbf16>, vector<128x256xf32> -> vector<128x256xf32>
    %3 = vector.extract_strided_slice %2 {offsets = [0, 0], sizes = [128, 128], strides = [1, 1]} : vector<128x256xf32> to vector<128x128xf32>
    %4 = arith.truncf %3 : vector<128x128xf32> to vector<128x128xbf16>
    %c0_3 = arith.constant 0 : index
    %c0_4 = arith.constant 0 : index
    %5 = vector.load %arg3[%c0_3, %c0_4] : memref<128x128xbf16, #tpu.memory_space<vmem>>, vector<128x128xbf16>
    tpu.vector_store %arg3[%c0_3, %c0_4], %4 {strides = array<i32>} : memref<128x128xbf16, #tpu.memory_space<vmem>>, vector<128x128xbf16>,
    %6 = vector.extract_strided_slice %2 {offsets = [0, 128], sizes = [128, 128], strides = [1, 1]} : vector<128x256xf32> to vector<128x128xf32>
    %7 = arith.truncf %6 : vector<128x128xf32> to vector<128x128xbf16>
    %c0_5 = arith.constant 0 : index
    %c0_6 = arith.constant 0 : index
    %8 = vector.load %arg4[%c0_5, %c0_6] : memref<128x128xbf16, #tpu.memory_space<vmem>>, vector<128x128xbf16>
    tpu.vector_store %arg4[%c0_5, %c0_6], %7 {strides = array<i32>} : memref<128x128xbf16, #tpu.memory_space<vmem>>, vector<128x128xbf16>,
    return
  }
  func.func @transform_0(%arg0: i32) -> (i32, i32) {
    %c0_i32 = arith.constant 0 : i32
    %c0_i32_0 = arith.constant 0 : i32
    return %arg0, %c0_i32 : i32, i32
  }
  func.func @transform_1(%arg0: i32) -> (i32, i32) {
    %c0_i32 = arith.constant 0 : i32
    %c0_i32_0 = arith.constant 0 : i32
    %c0_i32_1 = arith.constant 0 : i32
    return %c0_i32, %c0_i32_0 : i32, i32
  }
  func.func @transform_2(%arg0: i32) -> (i32, i32) {
    %c0_i32 = arith.constant 0 : i32
    %c0_i32_0 = arith.constant 0 : i32
    return %arg0, %c0_i32 : i32, i32
  }
  func.func @transform_3(%arg0: i32) -> (i32, i32) {
    %c0_i32 = arith.constant 0 : i32
    %c0_i32_0 = arith.constant 0 : i32
    return %arg0, %c0_i32 : i32, i32
  }
}

</mosaic_0001>

<bundles_post_ra>
// kernel: tpu_custom_call.1
= control target key start
LH: loop header
LB: loop body
LE: loop exit
PB: predicated region body
PF: predicated region fallthrough
CT: control target
= control target key end

     0   :  { %9 = vsyncpa [#allocation3], 0  ;;  %s947_s0 = inlined_call_operand.hbm [shape: bf16[128,128], index: 0, kind: input, shape index: {}]   ;;  %s948_s1 = inlined_call_operand.hbm [shape: bf16[128,256], index: 1, kind: input, shape index: {}]   ;;  %s949_s2 = inlined_call_operand.hbm [shape: bf16[128,128], index: 2, kind: output, shape index: {0}]   ;;  %s950_s3 = inlined_call_operand.hbm [shape: bf16[128,128], index: 3, kind: output, shape index: {1}]  }
   0x1   :  { %10 = vsyncpa [#allocation6], 0 }
   0x2   :  { %11 = vsyncpa [#allocation4], 0 }
   0x3   :  { %12 = vsyncpa [#allocation9], 0  ;;  %s846_s12 = smov [#allocation2]   ;;  %s750_s16 = scalar_lea.hbm %s947_s0, 1024 }
   0x4   :  { %s18_s13 = sshll.u32 %s846_s12, 4  ;;  %p751_p0 = scmp.ne.s32.totalorder %s947_s0, %s750_s16  ;;  %s19_s13 = int_to_ptr.vmem [resolvable:$true] %s18_s13 }
   0x5   :  { %p754_p1 = scmp.lt.u32.totalorder %s750_s16, %s947_s0 }
   0x7   :  { %p756_p2 = pnand %p754_p1, %p751_p0 }
   0x9   :  { %759 = shalt.err (!%p756_p2)
}
   0xa   :  { %s760_s21 = scalar_lea.vmem %s19_s13, 1024  ;;  %p765_p4 = scmp.lt.s32.totalorder %s19_s13, %s19_s13 }
   0xb   :  { %p761_p3 = scmp.ne.s32.totalorder %s19_s13, %s760_s21  ;;  %p766_p5 = scmp.lt.s32.totalorder %s760_s21, %s760_s21 }
   0xd   :  { %p767_p6 = por %p766_p5, %p765_p4 }
   0xf   :  { %p768_p7 = pnand %p767_p6, %p761_p3 }
  0x11   :  { %771 = shalt.err (!%p768_p7)
}
  0x12   :  { %s847_s22 = smov 64   ;;  %s848_s23 = smov 4  }
  0x13   :  { %24 = dma.hbm_to_vmem [thread:$0]  %s947_s0, 1024, %s19_s13, [#allocation3], %s847_s22, %s847_s22, %s848_s23  }
  0x14   :  { %s849_s26 = smov [#allocation5]   ;;  %s772_s30 = scalar_lea.hbm %s948_s1, 2048 }
  0x15   :  { %s30_s27 = sshll.u32 %s849_s26, 4  ;;  %p773_p8 = scmp.ne.s32.totalorder %s948_s1, %s772_s30  ;;  %s31_s27 = int_to_ptr.vmem [resolvable:$true] %s30_s27 }
  0x16   :  { %p776_p9 = scmp.lt.u32.totalorder %s772_s30, %s948_s1 }
  0x18   :  { %p778_p10 = pnand %p776_p9, %p773_p8 }
  0x1a   :  { %781 = shalt.err (!%p778_p10)
}
  0x1b   :  { %s782_s8 = scalar_lea.vmem %s31_s27, 2048  ;;  %p787_p12 = scmp.lt.s32.totalorder %s31_s27, %s31_s27 }
  0x1c   :  { %p783_p11 = scmp.ne.s32.totalorder %s31_s27, %s782_s8  ;;  %p788_p13 = scmp.lt.s32.totalorder %s782_s8, %s782_s8 }
  0x1e   :  { %p789_p0 = por %p788_p13, %p787_p12 }
  0x20   :  { %p790_p1 = pnand %p789_p0, %p783_p11 }
  0x22   :  { %793 = shalt.err (!%p790_p1)
}
  0x23   :  { %s850_s0 = smov 128   ;;  %s851_s9 = smov 8  }
  0x24   :  { %36 = dma.hbm_to_vmem [thread:$0]  %s948_s1, 2048, %s31_s27, [#allocation6], %s850_s0, %s850_s0, %s851_s9  }
  0x25   :  { %838 = dma.done.wait [#allocation3], 1024  }
  0x26   :  { %839 = vsyncadd [#allocation3], 4294966272 }
  0x27   :  { %840 = dma.done.wait [#allocation6], 2048  }
  0x28   :  { %841 = vsyncadd [#allocation6], 4294965248  ;;  %v852_v0 = vmov 0   ;;  %v718_v1 = vld [vmem:[#allocation5 + $0x4] ss:$8 sps:$4 sm:$0xff]   ;;  %v746_v21 = vld [vmem:[#allocation2 + $0x10] sm:$0xff]  }
  0x29   :  { %236 = vmatprep.mubr.bf16.mxu0 %v852_v0  ;;  %276 = vmatprep.mubr.bf16.mxu1 %v852_v0  ;;  %v720_v2 = vld [vmem:[#allocation5] ss:$8 sps:$4 sm:$0xff]   ;;  %v721_v3 = vld [vmem:[#allocation5 + $0x14] ss:$8 sps:$4 sm:$0xff]   ;;  %v723_v4 = vld [vmem:[#allocation5 + $0x10] ss:$8 sps:$4 sm:$0xff]  }
  0x2a   :  { %204 = vmatprep.subr.bf16.mxu0 %v718_v1  ;;  %693 = vmatprep.subr.bf16.mxu1 %v718_v1  ;;  %v724_v5 = vld [vmem:[#allocation5 + $0x24] ss:$8 sps:$4 sm:$0xff]   ;;  %v726_v6 = vld [vmem:[#allocation5 + $0x20] ss:$8 sps:$4 sm:$0xff]   ;;  %v727_v7 = vld [vmem:[#allocation5 + $0x34] ss:$8 sps:$4 sm:$0xff]  }
  0x2b   :  { %205 = vmatpush1.bf16.msra.mxu0 %v720_v2  ;;  %701 = vmatpush1.bf16.msra.mxu1 %v720_v2  ;;  %v729_v8 = vld [vmem:[#allocation5 + $0x30] ss:$8 sps:$4 sm:$0xff]   ;;  %v730_v9 = vld [vmem:[#allocation5 + $0x44] ss:$8 sps:$4 sm:$0xff]   ;;  %v732_v10 = vld [vmem:[#allocation5 + $0x40] ss:$8 sps:$4 sm:$0xff]  }
  0x2c   :  { %206 = vmatprep.subr.bf16.mxu0 %v721_v3  ;;  %694 = vmatprep.subr.bf16.mxu1 %v721_v3  ;;  %v733_v11 = vld [vmem:[#allocation5 + $0x54] ss:$8 sps:$4 sm:$0xff]   ;;  %v735_v12 = vld [vmem:[#allocation5 + $0x50] ss:$8 sps:$4 sm:$0xff]   ;;  %v736_v13 = vld [vmem:[#allocation5 + $0x64] ss:$8 sps:$4 sm:$0xff]  }
  0x2d   :  { %v738_v14 = vld [vmem:[#allocation5 + $0x60] ss:$8 sps:$4 sm:$0xff]   ;;  %v739_v15 = vld [vmem:[#allocation5 + $0x74] ss:$8 sps:$4 sm:$0xff]   ;;  %v741_v16 = vld [vmem:[#allocation5 + $0x70] ss:$8 sps:$4 sm:$0xff]  }
  0x2e   :  { %v742_v17 = vld [vmem:[#allocation2] sm:$0xff]   ;;  %v744_v19 = vld [vmem:[#allocation2 + $0x8] sm:$0xff]   ;;  %v747_v22 = vld [vmem:[#allocation2 + $0x30] sm:$0xff]   ;;  %s853_s1 = smov [#allocation7]   ;;  %s854_s13 = smov [#allocation8]  }
  0x2f   :  { %207 = vmatpush1.bf16.msra.mxu0 %v723_v4  ;;  %702 = vmatpush1.bf16.msra.mxu1 %v723_v4  ;;  %v743_v18 = vld [vmem:[#allocation2 + $0x20] sm:$0xff]   ;;  %v745_v20 = vld [vmem:[#allocation2 + $0x28] sm:$0xff]   ;;  %v748_v23 = vld [vmem:[#allocation2 + $0x18] sm:$0xff]   ;;  %s482_s12 = sshll.u32 %s853_s1, 4  ;;  %s494_s14 = sshll.u32 %s854_s13, 4  ;;  %s483_s12 = int_to_ptr.vmem [resolvable:$true] %s482_s12  ;;  %s910_s14 = int_to_ptr.vmem [resolvable:$true] %s494_s14 }
  0x30   :  { %208 = vmatprep.subr.bf16.mxu0 %v724_v5  ;;  %695 = vmatprep.subr.bf16.mxu1 %v724_v5  ;;  %v749_v24 = vld [vmem:[#allocation2 + $0x38] sm:$0xff]   ;;  %s794_s15 = scalar_lea.vmem %s483_s12, 1024  ;;  %p799_p3 = scmp.lt.s32.totalorder %s483_s12, %s483_s12 }
  0x31   :  { %p795_p2 = scmp.ne.s32.totalorder %s483_s12, %s794_s15  ;;  %p800_p4 = scmp.lt.s32.totalorder %s794_s15, %s794_s15 }
  0x33   :  { %209 = vmatpush1.bf16.msra.mxu0 %v726_v6  ;;  %703 = vmatpush1.bf16.msra.mxu1 %v726_v6  ;;  %p801_p5 = por %p800_p4, %p799_p3 }
  0x34   :  { %210 = vmatprep.subr.bf16.mxu0 %v727_v7  ;;  %696 = vmatprep.subr.bf16.mxu1 %v727_v7 }
  0x35   :  { %p802_p6 = pnand %p801_p5, %p795_p2 }
  0x37   :  { %211 = vmatpush1.bf16.msra.mxu0 %v729_v8  ;;  %704 = vmatpush1.bf16.msra.mxu1 %v729_v8 }
  0x38   :  { %212 = vmatprep.subr.bf16.mxu0 %v730_v9  ;;  %697 = vmatprep.subr.bf16.mxu1 %v730_v9 }
  0x3b   :  { %213 = vmatpush1.bf16.msra.mxu0 %v732_v10  ;;  %705 = vmatpush1.bf16.msra.mxu1 %v732_v10 }
  0x3c   :  { %214 = vmatprep.subr.bf16.mxu0 %v733_v11  ;;  %698 = vmatprep.subr.bf16.mxu1 %v733_v11 }
  0x3f   :  { %215 = vmatpush1.bf16.msra.mxu0 %v735_v12  ;;  %706 = vmatpush1.bf16.msra.mxu1 %v735_v12 }
  0x40   :  { %216 = vmatprep.subr.bf16.mxu0 %v736_v13  ;;  %699 = vmatprep.subr.bf16.mxu1 %v736_v13 }
  0x43   :  { %217 = vmatpush1.bf16.msra.mxu0 %v738_v14  ;;  %707 = vmatpush1.bf16.msra.mxu1 %v738_v14 }
  0x44   :  { %218 = vmatprep.subr.bf16.mxu0 %v739_v15  ;;  %700 = vmatprep.subr.bf16.mxu1 %v739_v15 }
  0x47   :  { %219 = vmatpush1.bf16.msra.mxu0 %v741_v16  ;;  %708 = vmatpush1.bf16.msra.mxu1 %v741_v16 }
  0x4a   :  { %237 = vmatmul.mubr.bf16.vlgmr.msra.gmra.mrb[0].mxu0 %v742_v17  ;;  %277 = vmatmul.mubr.bf16.vlgmr.msra.gmra.mrb[0].mxu1 %v743_v18 }
  0x4b   :  { %246 = vmatprep.mubr.bf16.mxu0 %v852_v0  ;;  %286 = vmatprep.mubr.bf16.mxu1 %v852_v0 }
  0x52   :  { %247 = vmatmul.mubr.bf16.gmra.mrb[4].mxu0 %v744_v19  ;;  %287 = vmatmul.mubr.bf16.gmra.mrb[4].mxu1 %v745_v20 }
  0x53   :  { %256 = vmatprep.mubr.bf16.mxu0 %v852_v0  ;;  %296 = vmatprep.mubr.bf16.mxu1 %v852_v0 }
  0x5a   :  { %257 = vmatmul.mubr.bf16.gmra.mrb[8].mxu0 %v746_v21  ;;  %297 = vmatmul.mubr.bf16.gmra.mrb[8].mxu1 %v747_v22 }
  0x5b   :  { %266 = vmatprep.mubr.bf16.mxu0 %v852_v0  ;;  %306 = vmatprep.mubr.bf16.mxu1 %v852_v0 }
  0x62   :  { %267 = vmatmul.mubr.bf16.gmra.mrb[12].mxu0 %v748_v23  ;;  %307 = vmatmul.mubr.bf16.gmra.mrb[12].mxu1 %v749_v24 }
 0x11d   :  { %v238_v25 = vpop.f32.mrb[0].mxu0  ;;  %v278_v26 = vpop.f32.mrb[0].mxu1 }
 0x11e   :  { %v240_v27 = vpop.f32.mrb[1].mxu0  ;;  %v280_v28 = vpop.f32.mrb[1].mxu1 }
 0x11f   :  { %v242_v29 = vpop.f32.mrb[2].mxu0  ;;  %v282_v30 = vpop.f32.mrb[2].mxu1 }
 0x120   :  { %v602_v31 = vpack.c.bf16 %v242_v29, %v238_v25  ;;  %v622_v32 = vpack.c.bf16 %v282_v30, %v278_v26  ;;  %v244_v33 = vpop.f32.mrb[3].mxu0  ;;  %v284_v34 = vpop.f32.mrb[3].mxu1 }
 0x121   :  { %v642_v35 = vpack.c.bf16 %v244_v33, %v240_v27  ;;  %v662_v36 = vpack.c.bf16 %v284_v34, %v280_v28 }
 0x122   :  { %603 = vst [vmem:[#allocation7] sm:$0xff] %v602_v31   ;;  %682 = vst [vmem:[#allocation7 + $0x20] sm:$0xff] %v622_v32  }
 0x123   :  { %643 = vst [vmem:[#allocation8] sm:$0xff] %v642_v35   ;;  %689 = vst [vmem:[#allocation8 + $0x20] sm:$0xff] %v662_v36  }
 0x125   :  { %v248_v37 = vpop.f32.mrb[4].mxu0  ;;  %v288_v38 = vpop.f32.mrb[4].mxu1 }
 0x126   :  { %v250_v39 = vpop.f32.mrb[5].mxu0  ;;  %v290_v40 = vpop.f32.mrb[5].mxu1 }
 0x127   :  { %v252_v41 = vpop.f32.mrb[6].mxu0  ;;  %v292_v42 = vpop.f32.mrb[6].mxu1 }
 0x128   :  { %v607_v43 = vpack.c.bf16 %v252_v41, %v248_v37  ;;  %v627_v44 = vpack.c.bf16 %v292_v42, %v288_v38  ;;  %v254_v45 = vpop.f32.mrb[7].mxu0  ;;  %v294_v46 = vpop.f32.mrb[7].mxu1 }
 0x129   :  { %v647_v47 = vpack.c.bf16 %v254_v45, %v250_v39  ;;  %v667_v48 = vpack.c.bf16 %v294_v46, %v290_v40 }
 0x12a   :  { %679 = vst [vmem:[#allocation7 + $0x8] sm:$0xff] %v607_v43   ;;  %683 = vst [vmem:[#allocation7 + $0x28] sm:$0xff] %v627_v44  }
 0x12b   :  { %686 = vst [vmem:[#allocation8 + $0x8] sm:$0xff] %v647_v47   ;;  %690 = vst [vmem:[#allocation8 + $0x28] sm:$0xff] %v667_v48  }
 0x12d   :  { %v258_v49 = vpop.f32.mrb[8].mxu0  ;;  %v298_v50 = vpop.f32.mrb[8].mxu1 }
 0x12e   :  { %v260_v51 = vpop.f32.mrb[9].mxu0  ;;  %v300_v52 = vpop.f32.mrb[9].mxu1 }
 0x12f   :  { %v262_v53 = vpop.f32.mrb[10].mxu0  ;;  %v302_v54 = vpop.f32.mrb[10].mxu1 }
 0x130   :  { %v612_v55 = vpack.c.bf16 %v262_v53, %v258_v49  ;;  %v632_v56 = vpack.c.bf16 %v302_v54, %v298_v50  ;;  %v264_v57 = vpop.f32.mrb[11].mxu0  ;;  %v304_v58 = vpop.f32.mrb[11].mxu1 }
 0x131   :  { %v652_v59 = vpack.c.bf16 %v264_v57, %v260_v51  ;;  %v672_v60 = vpack.c.bf16 %v304_v58, %v300_v52 }
 0x132   :  { %680 = vst [vmem:[#allocation7 + $0x10] sm:$0xff] %v612_v55   ;;  %684 = vst [vmem:[#allocation7 + $0x30] sm:$0xff] %v632_v56  }
 0x133   :  { %687 = vst [vmem:[#allocation8 + $0x10] sm:$0xff] %v652_v59   ;;  %691 = vst [vmem:[#allocation8 + $0x30] sm:$0xff] %v672_v60  }
 0x135   :  { %v268_v61 = vpop.f32.mrb[12].mxu0  ;;  %v308_v62 = vpop.f32.mrb[12].mxu1 }
 0x136   :  { %v270_v63 = vpop.f32.mrb[13].mxu0  ;;  %v310_v0 = vpop.f32.mrb[13].mxu1 }
 0x137   :  { %v272_v1 = vpop.f32.mrb[14].mxu0  ;;  %v312_v2 = vpop.f32.mrb[14].mxu1 }
 0x138   :  { %v617_v3 = vpack.c.bf16 %v272_v1, %v268_v61  ;;  %v637_v4 = vpack.c.bf16 %v312_v2, %v308_v62  ;;  %v274_v5 = vpop.f32.mrb[15].mxu0  ;;  %v314_v6 = vpop.f32.mrb[15].mxu1 }
 0x139   :  { %v657_v7 = vpack.c.bf16 %v274_v5, %v270_v63  ;;  %v677_v8 = vpack.c.bf16 %v314_v6, %v310_v0 }
 0x13a   :  { %681 = vst [vmem:[#allocation7 + $0x18] sm:$0xff] %v617_v3   ;;  %685 = vst [vmem:[#allocation7 + $0x38] sm:$0xff] %v637_v4  }
 0x13b   :  { %688 = vst [vmem:[#allocation8 + $0x18] sm:$0xff] %v657_v7   ;;  %692 = vst [vmem:[#allocation8 + $0x38] sm:$0xff] %v677_v8  }
 0x13c   :  { %805 = shalt.err (!%p802_p6)
}
 0x13d   :  { %s806_s18 = scalar_lea.hbm %s949_s2, 1024 }
 0x13e   :  { %p807_p7 = scmp.ne.s32.totalorder %s949_s2, %s806_s18  ;;  %p810_p8 = scmp.lt.u32.totalorder %s806_s18, %s949_s2 }
 0x140   :  { %p812_p9 = pnand %p810_p8, %p807_p7 }
 0x142   :  { %815 = shalt.err (!%p812_p9)
}
 0x143   :  { %488 = dma.vmem_to_hbm [thread:$0]  %s483_s12, 1024, %s949_s2, [#allocation4], %s847_s22, %s847_s22, %s848_s23  }
 0x144   :  { %s816_s27 = scalar_lea.vmem %s910_s14, 1024  ;;  %p821_p11 = scmp.lt.s32.totalorder %s910_s14, %s910_s14 }
 0x145   :  { %p817_p10 = scmp.ne.s32.totalorder %s910_s14, %s816_s27  ;;  %p822_p12 = scmp.lt.s32.totalorder %s816_s27, %s816_s27 }
 0x147   :  { %p823_p13 = por %p822_p12, %p821_p11 }
 0x149   :  { %p824_p0 = pnand %p823_p13, %p817_p10 }
 0x14b   :  { %827 = shalt.err (!%p824_p0)
}
 0x14c   :  { %s828_s30 = scalar_lea.hbm %s950_s3, 1024 }
 0x14d   :  { %p829_p1 = scmp.ne.s32.totalorder %s950_s3, %s828_s30  ;;  %p832_p2 = scmp.lt.u32.totalorder %s828_s30, %s950_s3 }
 0x14f   :  { %p834_p3 = pnand %p832_p2, %p829_p1 }
 0x151   :  { %837 = shalt.err (!%p834_p3)
}
 0x152   :  { %500 = dma.vmem_to_hbm [thread:$0]  %s910_s14, 1024, %s950_s3, [#allocation9], %s847_s22, %s847_s22, %s848_s23  }
 0x153   :  { %842 = dma.done.wait [#allocation4], 1024  }
 0x154   :  { %843 = vsyncadd [#allocation4], 4294966272 }
 0x155   :  { %844 = dma.done.wait [#allocation9], 1024  }
 0x156   :  { %845 = vsyncadd [#allocation9], 4294966272 }
 0x157   :  { %507 = vsyncpa [#allocation3], 1 }
 0x158   :  { %508 = vsyncpa [#allocation6], 1 }
 0x159   :  { %509 = vsyncpa [#allocation4], 1 }
 0x15a   :  { %510 = vsyncpa [#allocation9], 1 }

</bundles_post_ra>
